<compile_context>
chip_gen: v7x
topology: tpu7x:2x2x1
jax: 0.10.0
libtpu: 0.0.40
codegen_flags: <defaults>
</compile_context>

<pallas_src>
import functools

import jax
import jax.numpy as jnp
from jax import lax
from jax.experimental import pallas as pl
from jax.experimental.pallas import tpu as pltpu

ALPHA = 0.5
IOU_THRESHOLD = 0.5
_LANE = 128
_MAX_M_TILE = 2048  # granularity cap: keeps m-axis pipelining even with huge budgets


def _round_up(x, m):
    return ((x + m - 1) // m) * m


def _vmem_limit_bytes():
    """Scoped-VMEM request: half of physical VMEM, capped at 64 MiB."""
    try:
        phys = pltpu.get_tpu_info().vmem_capacity_bytes
    except Exception:
        phys = 64 * 1024 * 1024
    return max(16 * 1024 * 1024, min(phys // 2, 64 * 1024 * 1024))


def _choose_m_tile(M, C, J, live_budget_bytes):
    """Largest multiple-of-128 tile whose live VMEM fits the budget.

    Per-lane f32 bytes ~ 2x double-buffered (4+C) input rows
                        + ~4 live (C,tm) temporaries
                        + ~6 live (J,tm) temporaries
                        + assorted (1,tm) rows.
    """
    per_lane = 4 * (2 * 2 * (4 + C) + 4 * C + 6 * J + 16)
    tm = int(live_budget_bytes // per_lane)
    tm = max(_LANE, (tm // _LANE) * _LANE)
    tm = min(tm, _MAX_M_TILE, _round_up(M, _LANE))
    return tm


def _pocoo_kernel(pred_ref, score_ref, gtr_ref, gtc_ref, out_ref, *,
                  alpha, iou_threshold, inv_w, inv_h, m_valid, mask_pad):
    """One (batch b, M-tile m) grid step.

    Ref layouts (lane axis last):
      pred_ref  : (4,   tm)  predictions, rows = (x, y, w, h)
      score_ref : (C,   tm)  class scores
      gtr_ref   : (J,   4)   gt boxes (row layout -> (J,1) corner columns)
      gtc_ref   : (4+C, J)   [gt boxes ; gt labels]^T, gather-matmul LHS
      out_ref   : (1,   1)   per (b, m-tile) partial loss sum
    """
    pred = pred_ref[...].astype(jnp.float32)      # (4, tm)
    scores = score_ref[...].astype(jnp.float32)   # (C, tm)
    gt_r = gtr_ref[...]                           # (J, 4)
    gt_c = gtc_ref[...]                           # (4+C, J)

    J = gt_r.shape[0]
    tm = scores.shape[1]

    # --- corners: predictions as (1, tm) rows, gt as (J, 1) columns ----------
    half_pw = pred[2:3, :] * 0.5
    half_ph = pred[3:4, :] * 0.5
    pred_x1 = pred[0:1, :] - half_pw
    pred_x2 = pred[0:1, :] + half_pw
    pred_y1 = pred[1:2, :] - half_ph
    pred_y2 = pred[1:2, :] + half_ph

    half_gw = gt_r[:, 2:3] * 0.5
    half_gh = gt_r[:, 3:4] * 0.5
    gt_x1 = gt_r[:, 0:1] - half_gw
    gt_x2 = gt_r[:, 0:1] + half_gw
    gt_y1 = gt_r[:, 1:2] - half_gh
    gt_y2 = gt_r[:, 1:2] + half_gh

    # --- IoU matrix (J, tm): M on lanes ---------------------------------------
    inter_w = jnp.maximum(
        jnp.minimum(pred_x2, gt_x2) - jnp.maximum(pred_x1, gt_x1), 0.0)
    inter_h = jnp.maximum(
        jnp.minimum(pred_y2, gt_y2) - jnp.maximum(pred_y1, gt_y1), 0.0)
    inter_area = inter_w * inter_h                 # (J, tm)
    pred_area = pred[2:3, :] * pred[3:4, :]        # (1, tm)  w*h directly
    gt_area = gt_r[:, 2:3] * gt_r[:, 3:4]          # (J, 1)
    union = pred_area + gt_area - inter_area       # (J, tm)
    iou = inter_area * pl.reciprocal(union + 1e-6, approx=True)

    # --- best-matching gt per prediction (first maximal index, like torch) ----
    matched_iou = jnp.max(iou, axis=0, keepdims=True)      # (1, tm)
    j_iota = lax.broadcasted_iota(jnp.int32, (J, tm), 0)
    best_idx = jnp.min(jnp.where(iou >= matched_iou, j_iota, J),
                       axis=0, keepdims=True)
    one_hot = (j_iota == best_idx).astype(jnp.float32)     # (J, tm)

    # --- fused gather of matched boxes + labels: (4+C, J) @ (J, tm) -----------
    matched = jnp.dot(gt_c, one_hot, preferred_element_type=jnp.float32)
    matched_w = matched[2:3, :]                   # (1, tm)
    matched_h = matched[3:4, :]
    matched_labels = matched[4:, :]               # (C, tm)

    # --- size factor (parity with reference: no clamp of base) ---------------
    base = 1.0 - jnp.sqrt((matched_w * inv_w) * (matched_h * inv_h))
    if alpha == 0.5:
        size_factor = jnp.sqrt(base)              # pow(x, 0.5) -> single EUP sqrt
    else:
        size_factor = jnp.power(base, alpha)

    pos_mask = (matched_iou > iou_threshold).astype(jnp.float32)   # (1, tm)
    neg_mask = 1.0 - pos_mask
    pos_coef = pos_mask * (size_factor + 1.0)     # (1, tm), hoisted once per tile

    # --- fused BCE (pos + neg) with shared log terms ---------------------------
    log_p = jnp.maximum(jnp.log(scores), -100.0)          # (C, tm)
    log_1mp = jnp.maximum(jnp.log(1.0 - scores), -100.0)  # (C, tm)

    coef_p = pos_coef * matched_labels                                    # (C, tm)
    coef_q = pos_coef * (1.0 - matched_labels) + neg_mask * (scores * scores)
    contrib = -(coef_p * log_p + coef_q * log_1mp)                        # (C, tm)

    if mask_pad:
        lane = (lax.broadcasted_iota(jnp.int32, (1, tm), 1)
                + pl.program_id(1) * tm)
        contrib = jnp.where(lane < m_valid, contrib, 0.0)   # where: NaN-safe zero

    col = jnp.sum(contrib, axis=0, keepdims=True)   # (1, tm)
    out_ref[...] = jnp.sum(col, axis=1, keepdims=True)   # (1, 1)


def pocoo_loss(B_final, final_class_scores, gt_boxes, gt_labels, img_size,
               alpha=ALPHA, iou_threshold=IOU_THRESHOLD,
               transport_dtype=jnp.float32):
    H, W = img_size
    B, M, _ = B_final.shape
    _, J, _ = gt_boxes.shape
    C = gt_labels.shape[-1]

    vmem_limit = _vmem_limit_bytes()
    tm = _choose_m_tile(M, C, J, vmem_limit // 2)
    m_pad_total = _round_up(M, tm)
    num_m_tiles = m_pad_total // tm
    pad = m_pad_total - M

    # Lane-dense layouts (M on lanes).  transport_dtype=bfloat16 halves HBM
    # bytes for the dominant tensors on v5e; in-kernel math stays f32.
    pred_t = jnp.transpose(B_final, (0, 2, 1)).astype(transport_dtype)            # (B,4,Mp)
    scores_t = jnp.transpose(final_class_scores, (0, 2, 1)).astype(transport_dtype)  # (B,C,Mp)
    if pad:
        pred_t = jnp.pad(pred_t, ((0, 0), (0, 0), (0, pad)))
        scores_t = jnp.pad(scores_t, ((0, 0), (0, 0), (0, pad)),
                           constant_values=0.5)   # finite logs in padded lanes
    gt_rows = gt_boxes.astype(jnp.float32)                                        # (B,J,4)
    gt_cat_t = jnp.transpose(
        jnp.concatenate([gt_boxes, gt_labels], axis=-1).astype(jnp.float32),
        (0, 2, 1))                                                                # (B,4+C,J)

    kernel = functools.partial(
        _pocoo_kernel, alpha=float(alpha), iou_threshold=float(iou_threshold),
        inv_w=1.0 / float(W), inv_h=1.0 / float(H),
        m_valid=M, mask_pad=bool(pad))

    # TODO(synk): on v5e, sweep pipeline_mode=pl.Buffered(3) on the scores spec
    # if an xprof trace shows exposed DMA behind the per-tile compute.
    partial_sums = pl.pallas_call(
        kernel,
        out_shape=jax.ShapeDtypeStruct((B, num_m_tiles, 1, 1), jnp.float32),
        grid_spec=pltpu.PrefetchScalarGridSpec(
            num_scalar_prefetch=0,
            grid=(B, num_m_tiles),
            in_specs=[
                pl.BlockSpec((None, 4, tm), lambda b, m: (b, 0, m)),
                pl.BlockSpec((None, C, tm), lambda b, m: (b, 0, m)),
                pl.BlockSpec((None, J, 4), lambda b, m: (b, 0, 0)),
                pl.BlockSpec((None, 4 + C, J), lambda b, m: (b, 0, 0)),
            ],
            out_specs=pl.BlockSpec((None, None, 1, 1),
                                   lambda b, m: (b, m, 0, 0)),
        ),
        compiler_params=pltpu.CompilerParams(
            # Each (b, m) step writes its own partial-sum block, so both axes
            # are parallel (lets v7x use both TensorCores even when B == 1).
            dimension_semantics=("parallel", "parallel"),
            vmem_limit_bytes=vmem_limit,
            # Let XLA fuse the wrapper transpose/pad into the input DMA
            # instead of materializing the transposed score slab in HBM.
            allow_input_fusion=[True, True, True, True]),
    )(pred_t, scores_t, gt_rows, gt_cat_t)

    return jnp.sum(partial_sums) / B


# ----------------------------- pure-JAX reference -----------------------------
def _bce_elementwise(pred, target):
    # torch.nn.BCELoss(reduction='none'): each log term clamped at -100.
    log_p = jnp.maximum(jnp.log(pred), -100.0)
    log_1mp = jnp.maximum(jnp.log(1.0 - pred), -100.0)
    return -(target * log_p + (1.0 - target) * log_1mp)


def _pocoo_loss_ref(B_final, scores, gt_boxes, gt_labels, img_size,
                    alpha=ALPHA, iou_threshold=IOU_THRESHOLD):
    H, W = img_size
    B, M, _ = B_final.shape
    _, J, _ = gt_boxes.shape

    px1 = B_final[..., 0:1] - B_final[..., 2:3] / 2
    py1 = B_final[..., 1:2] - B_final[..., 3:4] / 2
    px2 = B_final[..., 0:1] + B_final[..., 2:3] / 2
    py2 = B_final[..., 1:2] + B_final[..., 3:4] / 2
    gx1 = (gt_boxes[..., 0:1] - gt_boxes[..., 2:3] / 2).transpose(0, 2, 1)
    gy1 = (gt_boxes[..., 1:2] - gt_boxes[..., 3:4] / 2).transpose(0, 2, 1)
    gx2 = (gt_boxes[..., 0:1] + gt_boxes[..., 2:3] / 2).transpose(0, 2, 1)
    gy2 = (gt_boxes[..., 1:2] + gt_boxes[..., 3:4] / 2).transpose(0, 2, 1)
    ia = (jnp.clip(jnp.minimum(px2, gx2) - jnp.maximum(px1, gx1), 0) *
          jnp.clip(jnp.minimum(py2, gy2) - jnp.maximum(py1, gy1), 0))
    pa = (px2 - px1) * (py2 - py1)
    ga = (gx2 - gx1) * (gy2 - gy1)
    iou = ia / (pa + ga - ia + 1e-6)

    matched_iou = iou.max(axis=-1)
    best = jnp.argmax(iou, axis=-1)
    mb = jnp.take_along_axis(gt_boxes, best[..., None], axis=1)
    ml = jnp.take_along_axis(gt_labels, best[..., None], axis=1)
    sf = (1 - jnp.sqrt(mb[..., 2] / W * (mb[..., 3] / H))) ** alpha
    pos = (matched_iou > iou_threshold).astype(jnp.float32)
    neg = 1 - pos
    lp = _bce_elementwise(scores, ml) * pos[..., None] * (sf[..., None] + 1)
    ln = (_bce_elementwise(scores, jnp.zeros_like(scores)) * scores ** 2
          * neg[..., None])
    return (lp.sum() + ln.sum()) / B


if __name__ == "__main__":
    key = jax.random.PRNGKey(0)
    B, M, J, C = 2, 16, 8, 4
    img_size = (64, 64)
    H, W = img_size

    k1, k2, k3, k4, k5 = jax.random.split(key, 5)
    # gt boxes: centers inside the image, sizes a fraction of the image
    gt_xy = jax.random.uniform(k1, (B, J, 2), jnp.float32, 8.0, 56.0)
    gt_wh = jax.random.uniform(k2, (B, J, 2), jnp.float32, 4.0, 20.0)
    gt_boxes = jnp.concatenate([gt_xy, gt_wh], axis=-1)
    # predictions: perturbed copies of (tiled) gt boxes so some IoUs exceed 0.5
    reps = M // J
    pred_base = jnp.tile(gt_boxes, (1, reps, 1))
    B_final = pred_base + jax.random.uniform(k3, (B, M, 4), jnp.float32, -3.0, 3.0)
    B_final = B_final.at[..., 2:4].set(jnp.maximum(B_final[..., 2:4], 1.0))
    # class scores in (0,1) and binary gt labels
    final_class_scores = jax.nn.sigmoid(
        jax.random.normal(k4, (B, M, C), jnp.float32))
    gt_labels = (jax.random.uniform(k5, (B, J, C)) > 0.5).astype(jnp.float32)

    loss_fn = jax.jit(functools.partial(pocoo_loss, img_size=img_size))
    loss = loss_fn(B_final, final_class_scores, gt_boxes, gt_labels)
    loss = jax.block_until_ready(loss)

    ref = _pocoo_loss_ref(B_final, final_class_scores, gt_boxes, gt_labels,
                          img_size)
    assert jnp.isfinite(loss), f"non-finite loss: {loss}"
    assert jnp.allclose(loss, ref, rtol=1e-4, atol=1e-4), (loss, ref)
    print("KERNEL_OK")
</pallas_src>

<mosaic_0001>
module attributes {stable_mosaic.version = 11 : i64} {
  func.func @_pocoo_kernel(%arg0: i32, %arg1: i32, %arg2: memref<1x4x128xf32, #tpu.memory_space<vmem>>, %arg3: memref<1x4x128xf32, #tpu.memory_space<vmem>>, %arg4: memref<1x8x4xf32, #tpu.memory_space<vmem>>, %arg5: memref<1x8x8xf32, #tpu.memory_space<vmem>>, %arg6: memref<1x1x1x1xf32, #tpu.memory_space<vmem>>) attributes {dimension_semantics = [#tpu.dimension_semantics<parallel>, #tpu.dimension_semantics<parallel>], iteration_bounds = array<i64: 2, 1>, scalar_prefetch = 0 : i64, scratch_operands = 0 : i64, tpu.core_type = #tpu.core_type<tc>, window_params = [{transform_indices = @transform_0, window_bounds = array<i64: 1, 4, 128>}, {transform_indices = @transform_1, window_bounds = array<i64: 1, 4, 128>}, {transform_indices = @transform_2, window_bounds = array<i64: 1, 8, 4>}, {transform_indices = @transform_3, window_bounds = array<i64: 1, 8, 8>}, {transform_indices = @transform_4, window_bounds = array<i64: 1, 1, 1, 1>}]} {
    %c0 = arith.constant 0 : index
    %c0_0 = arith.constant 0 : index
    %c0_1 = arith.constant 0 : index
    %0 = vector.load %arg2[%c0, %c0_0, %c0_1] : memref<1x4x128xf32, #tpu.memory_space<vmem>>, vector<1x4x128xf32>
    %1 = vector.shape_cast %0 : vector<1x4x128xf32> to vector<4x128xf32>
    %c0_2 = arith.constant 0 : index
    %c0_3 = arith.constant 0 : index
    %c0_4 = arith.constant 0 : index
    %2 = vector.load %arg3[%c0_2, %c0_3, %c0_4] : memref<1x4x128xf32, #tpu.memory_space<vmem>>, vector<1x4x128xf32>
    %3 = vector.shape_cast %2 : vector<1x4x128xf32> to vector<4x128xf32>
    %c0_5 = arith.constant 0 : index
    %c0_6 = arith.constant 0 : index
    %c0_7 = arith.constant 0 : index
    %4 = vector.load %arg4[%c0_5, %c0_6, %c0_7] : memref<1x8x4xf32, #tpu.memory_space<vmem>>, vector<1x8x4xf32>
    %5 = vector.shape_cast %4 : vector<1x8x4xf32> to vector<8x4xf32>
    %c0_8 = arith.constant 0 : index
    %c0_9 = arith.constant 0 : index
    %c0_10 = arith.constant 0 : index
    %6 = vector.load %arg5[%c0_8, %c0_9, %c0_10] : memref<1x8x8xf32, #tpu.memory_space<vmem>>, vector<1x8x8xf32>
    %7 = vector.shape_cast %6 : vector<1x8x8xf32> to vector<8x8xf32>
    %8 = vector.extract_strided_slice %1 {offsets = [2, 0], sizes = [1, 128], strides = [1, 1]} : vector<4x128xf32> to vector<1x128xf32>
    %cst = arith.constant 5.000000e-01 : f32
    %9 = vector.broadcast %cst : f32 to vector<1x128xf32>
    %10 = arith.mulf %8, %9 : vector<1x128xf32>
    %11 = vector.extract_strided_slice %1 {offsets = [3, 0], sizes = [1, 128], strides = [1, 1]} : vector<4x128xf32> to vector<1x128xf32>
    %cst_11 = arith.constant 5.000000e-01 : f32
    %12 = vector.broadcast %cst_11 : f32 to vector<1x128xf32>
    %13 = arith.mulf %11, %12 : vector<1x128xf32>
    %14 = vector.extract_strided_slice %1 {offsets = [0, 0], sizes = [1, 128], strides = [1, 1]} : vector<4x128xf32> to vector<1x128xf32>
    %15 = arith.subf %14, %10 : vector<1x128xf32>
    %16 = vector.extract_strided_slice %1 {offsets = [0, 0], sizes = [1, 128], strides = [1, 1]} : vector<4x128xf32> to vector<1x128xf32>
    %17 = arith.addf %16, %10 : vector<1x128xf32>
    %18 = vector.extract_strided_slice %1 {offsets = [1, 0], sizes = [1, 128], strides = [1, 1]} : vector<4x128xf32> to vector<1x128xf32>
    %19 = arith.subf %18, %13 : vector<1x128xf32>
    %20 = vector.extract_strided_slice %1 {offsets = [1, 0], sizes = [1, 128], strides = [1, 1]} : vector<4x128xf32> to vector<1x128xf32>
    %21 = arith.addf %20, %13 : vector<1x128xf32>
    %22 = vector.extract_strided_slice %5 {offsets = [0, 2], sizes = [8, 1], strides = [1, 1]} : vector<8x4xf32> to vector<8x1xf32>
    %cst_12 = arith.constant 5.000000e-01 : f32
    %23 = vector.broadcast %cst_12 : f32 to vector<8x1xf32>
    %24 = arith.mulf %22, %23 : vector<8x1xf32>
    %25 = vector.extract_strided_slice %5 {offsets = [0, 3], sizes = [8, 1], strides = [1, 1]} : vector<8x4xf32> to vector<8x1xf32>
    %cst_13 = arith.constant 5.000000e-01 : f32
    %26 = vector.broadcast %cst_13 : f32 to vector<8x1xf32>
    %27 = arith.mulf %25, %26 : vector<8x1xf32>
    %28 = vector.extract_strided_slice %5 {offsets = [0, 0], sizes = [8, 1], strides = [1, 1]} : vector<8x4xf32> to vector<8x1xf32>
    %29 = arith.subf %28, %24 : vector<8x1xf32>
    %30 = vector.extract_strided_slice %5 {offsets = [0, 0], sizes = [8, 1], strides = [1, 1]} : vector<8x4xf32> to vector<8x1xf32>
    %31 = arith.addf %30, %24 : vector<8x1xf32>
    %32 = vector.extract_strided_slice %5 {offsets = [0, 1], sizes = [8, 1], strides = [1, 1]} : vector<8x4xf32> to vector<8x1xf32>
    %33 = arith.subf %32, %27 : vector<8x1xf32>
    %34 = vector.extract_strided_slice %5 {offsets = [0, 1], sizes = [8, 1], strides = [1, 1]} : vector<8x4xf32> to vector<8x1xf32>
    %35 = arith.addf %34, %27 : vector<8x1xf32>
    %36 = vector.broadcast %17 : vector<1x128xf32> to vector<8x128xf32>
    %37 = vector.broadcast %31 : vector<8x1xf32> to vector<8x128xf32>
    %38 = arith.minimumf %36, %37 : vector<8x128xf32>
    %39 = vector.broadcast %15 : vector<1x128xf32> to vector<8x128xf32>
    %40 = vector.broadcast %29 : vector<8x1xf32> to vector<8x128xf32>
    %41 = arith.maximumf %39, %40 : vector<8x128xf32>
    %42 = arith.subf %38, %41 : vector<8x128xf32>
    %cst_14 = arith.constant 0.000000e+00 : f32
    %43 = vector.broadcast %cst_14 : f32 to vector<8x128xf32>
    %44 = arith.maximumf %42, %43 : vector<8x128xf32>
    %45 = vector.broadcast %21 : vector<1x128xf32> to vector<8x128xf32>
    %46 = vector.broadcast %35 : vector<8x1xf32> to vector<8x128xf32>
    %47 = arith.minimumf %45, %46 : vector<8x128xf32>
    %48 = vector.broadcast %19 : vector<1x128xf32> to vector<8x128xf32>
    %49 = vector.broadcast %33 : vector<8x1xf32> to vector<8x128xf32>
    %50 = arith.maximumf %48, %49 : vector<8x128xf32>
    %51 = arith.subf %47, %50 : vector<8x128xf32>
    %cst_15 = arith.constant 0.000000e+00 : f32
    %52 = vector.broadcast %cst_15 : f32 to vector<8x128xf32>
    %53 = arith.maximumf %51, %52 : vector<8x128xf32>
    %54 = arith.mulf %44, %53 : vector<8x128xf32>
    %55 = vector.extract_strided_slice %1 {offsets = [2, 0], sizes = [1, 128], strides = [1, 1]} : vector<4x128xf32> to vector<1x128xf32>
    %56 = vector.extract_strided_slice %1 {offsets = [3, 0], sizes = [1, 128], strides = [1, 1]} : vector<4x128xf32> to vector<1x128xf32>
    %57 = arith.mulf %55, %56 : vector<1x128xf32>
    %58 = vector.extract_strided_slice %5 {offsets = [0, 2], sizes = [8, 1], strides = [1, 1]} : vector<8x4xf32> to vector<8x1xf32>
    %59 = vector.extract_strided_slice %5 {offsets = [0, 3], sizes = [8, 1], strides = [1, 1]} : vector<8x4xf32> to vector<8x1xf32>
    %60 = arith.mulf %58, %59 : vector<8x1xf32>
    %61 = vector.broadcast %57 : vector<1x128xf32> to vector<8x128xf32>
    %62 = vector.broadcast %60 : vector<8x1xf32> to vector<8x128xf32>
    %63 = arith.addf %61, %62 : vector<8x128xf32>
    %64 = arith.subf %63, %54 : vector<8x128xf32>
    %cst_16 = arith.constant 9.99999997E-7 : f32
    %65 = vector.broadcast %cst_16 : f32 to vector<8x128xf32>
    %66 = arith.addf %64, %65 : vector<8x128xf32>
    %67 = tpu.reciprocal %66 {approx = true} : vector<8x128xf32> -> vector<8x128xf32>
    %68 = arith.mulf %54, %67 : vector<8x128xf32>
    %cst_17 = arith.constant dense<0xFF800000> : vector<128xf32>
    %69 = vector.multi_reduction <maximumf>, %68, %cst_17 [0] : vector<8x128xf32> to vector<128xf32>
    %70 = vector.shape_cast %69 : vector<128xf32> to vector<1x128xf32>
    %71 = tpu.iota {dimensions = array<i32: 0>} : vector<8x128xi32>
    %72 = vector.broadcast %70 : vector<1x128xf32> to vector<8x128xf32>
    %73 = arith.cmpf oge, %68, %72 : vector<8x128xf32>
    %c8_i32 = arith.constant 8 : i32
    %74 = vector.broadcast %c8_i32 : i32 to vector<8x128xi32>
    %75 = arith.select %73, %71, %74 : vector<8x128xi1>, vector<8x128xi32>
    %cst_18 = arith.constant dense<2147483647> : vector<128xi32>
    %76 = vector.multi_reduction <minsi>, %75, %cst_18 [0] : vector<8x128xi32> to vector<128xi32>
    %77 = vector.shape_cast %76 : vector<128xi32> to vector<1x128xi32>
    %78 = vector.broadcast %77 : vector<1x128xi32> to vector<8x128xi32>
    %79 = arith.cmpi eq, %71, %78 : vector<8x128xi32>
    %80 = arith.extui %79 : vector<8x128xi1> to vector<8x128xi32>
    %81 = arith.sitofp %80 : vector<8x128xi32> to vector<8x128xf32>
    %cst_19 = arith.constant dense<0.000000e+00> : vector<8x128xf32>
    %82 = tpu.matmul %7, %81, %cst_19 {dimension_numbers = #tpu.dot_dimension_numbers<[1], [0], [0], [1], [0, 0, 1, 1], [], []>} : vector<8x8xf32>, vector<8x128xf32>, vector<8x128xf32> -> vector<8x128xf32>
    %83 = vector.extract_strided_slice %82 {offsets = [2, 0], sizes = [1, 128], strides = [1, 1]} : vector<8x128xf32> to vector<1x128xf32>
    %84 = vector.extract_strided_slice %82 {offsets = [3, 0], sizes = [1, 128], strides = [1, 1]} : vector<8x128xf32> to vector<1x128xf32>
    %85 = vector.extract_strided_slice %82 {offsets = [4, 0], sizes = [4, 128], strides = [1, 1]} : vector<8x128xf32> to vector<4x128xf32>
    %cst_20 = arith.constant 1.562500e-02 : f32
    %86 = vector.broadcast %cst_20 : f32 to vector<1x128xf32>
    %87 = arith.mulf %83, %86 : vector<1x128xf32>
    %cst_21 = arith.constant 1.562500e-02 : f32
    %88 = vector.broadcast %cst_21 : f32 to vector<1x128xf32>
    %89 = arith.mulf %84, %88 : vector<1x128xf32>
    %90 = arith.mulf %87, %89 : vector<1x128xf32>
    %91 = math.sqrt %90 : vector<1x128xf32>
    %cst_22 = arith.constant 1.000000e+00 : f32
    %92 = vector.broadcast %cst_22 : f32 to vector<1x128xf32>
    %93 = arith.subf %92, %91 : vector<1x128xf32>
    %94 = math.sqrt %93 : vector<1x128xf32>
    %cst_23 = arith.constant 5.000000e-01 : f32
    %95 = vector.broadcast %cst_23 : f32 to vector<1x128xf32>
    %96 = arith.cmpf ogt, %70, %95 : vector<1x128xf32>
    %97 = arith.extui %96 : vector<1x128xi1> to vector<1x128xi32>
    %98 = arith.sitofp %97 : vector<1x128xi32> to vector<1x128xf32>
    %cst_24 = arith.constant 1.000000e+00 : f32
    %99 = vector.broadcast %cst_24 : f32 to vector<1x128xf32>
    %100 = arith.subf %99, %98 : vector<1x128xf32>
    %cst_25 = arith.constant 1.000000e+00 : f32
    %101 = vector.broadcast %cst_25 : f32 to vector<1x128xf32>
    %102 = arith.addf %94, %101 : vector<1x128xf32>
    %103 = arith.mulf %98, %102 : vector<1x128xf32>
    %104 = math.log %3 : vector<4x128xf32>
    %cst_26 = arith.constant -1.000000e+02 : f32
    %105 = vector.broadcast %cst_26 : f32 to vector<4x128xf32>
    %106 = arith.maximumf %104, %105 : vector<4x128xf32>
    %cst_27 = arith.constant 1.000000e+00 : f32
    %107 = vector.broadcast %cst_27 : f32 to vector<4x128xf32>
    %108 = arith.subf %107, %3 : vector<4x128xf32>
    %109 = math.log %108 : vector<4x128xf32>
    %cst_28 = arith.constant -1.000000e+02 : f32
    %110 = vector.broadcast %cst_28 : f32 to vector<4x128xf32>
    %111 = arith.maximumf %109, %110 : vector<4x128xf32>
    %112 = vector.broadcast %103 : vector<1x128xf32> to vector<4x128xf32>
    %113 = arith.mulf %112, %85 : vector<4x128xf32>
    %cst_29 = arith.constant 1.000000e+00 : f32
    %114 = vector.broadcast %cst_29 : f32 to vector<4x128xf32>
    %115 = arith.subf %114, %85 : vector<4x128xf32>
    %116 = vector.broadcast %103 : vector<1x128xf32> to vector<4x128xf32>
    %117 = arith.mulf %116, %115 : vector<4x128xf32>
    %118 = arith.mulf %3, %3 : vector<4x128xf32>
    %119 = vector.broadcast %100 : vector<1x128xf32> to vector<4x128xf32>
    %120 = arith.mulf %119, %118 : vector<4x128xf32>
    %121 = arith.addf %117, %120 : vector<4x128xf32>
    %122 = arith.mulf %113, %106 : vector<4x128xf32>
    %123 = arith.mulf %121, %111 : vector<4x128xf32>
    %124 = arith.addf %122, %123 : vector<4x128xf32>
    %cst_30 = arith.constant 0.000000e+00 : f32
    %125 = vector.broadcast %cst_30 : f32 to vector<4x128xf32>
    %126 = arith.subf %125, %124 : vector<4x128xf32>
    %127 = tpu.iota {dimensions = array<i32: 1>} : vector<1x128xi32>
    %c128_i32 = arith.constant 128 : i32
    %128 = arith.muli %arg1, %c128_i32 : i32
    %129 = vector.broadcast %128 : i32 to vector<1x128xi32>
    %130 = arith.addi %127, %129 : vector<1x128xi32>
    %c16_i32 = arith.constant 16 : i32
    %131 = vector.broadcast %c16_i32 : i32 to vector<1x128xi32>
    %132 = arith.cmpi slt, %130, %131 : vector<1x128xi32>
    %cst_31 = arith.constant 0.000000e+00 : f32
    %133 = vector.shape_cast %132 : vector<1x128xi1> to vector<1x128xi1>
    %134 = vector.broadcast %133 : vector<1x128xi1> to vector<4x128xi1>
    %135 = vector.broadcast %cst_31 : f32 to vector<4x128xf32>
    %136 = arith.select %134, %126, %135 : vector<4x128xi1>, vector<4x128xf32>
    %cst_32 = arith.constant dense<0.000000e+00> : vector<128xf32>
    %137 = vector.multi_reduction <add>, %136, %cst_32 [0] : vector<4x128xf32> to vector<128xf32>
    %138 = vector.shape_cast %137 : vector<128xf32> to vector<1x128xf32>
    %cst_33 = arith.constant dense<0.000000e+00> : vector<1xf32>
    %139 = vector.multi_reduction <add>, %138, %cst_33 [1] : vector<1x128xf32> to vector<1xf32>
    %140 = vector.shape_cast %139 : vector<1xf32> to vector<1x1xf32>
    %c0_34 = arith.constant 0 : index
    %c0_35 = arith.constant 0 : index
    %c0_36 = arith.constant 0 : index
    %c0_37 = arith.constant 0 : index
    %141 = vector.load %arg6[%c0_34, %c0_35, %c0_36, %c0_37] : memref<1x1x1x1xf32, #tpu.memory_space<vmem>>, vector<1x1x1x1xf32>
    %142 = vector.shape_cast %141 : vector<1x1x1x1xf32> to vector<1x1xf32>
    %143 = vector.shape_cast %140 : vector<1x1xf32> to vector<1x1x1x1xf32>
    tpu.vector_store %arg6[%c0_34, %c0_35, %c0_36, %c0_37], %143 {strides = array<i32>} : memref<1x1x1x1xf32, #tpu.memory_space<vmem>>, vector<1x1x1x1xf32>,
    return
  }
  func.func @transform_0(%arg0: i32, %arg1: i32) -> (i32, i32, i32) {
    %c0_i32 = arith.constant 0 : i32
    %c0_i32_0 = arith.constant 0 : i32
    return %arg0, %c0_i32, %arg1 : i32, i32, i32
  }
  func.func @transform_1(%arg0: i32, %arg1: i32) -> (i32, i32, i32) {
    %c0_i32 = arith.constant 0 : i32
    %c0_i32_0 = arith.constant 0 : i32
    return %arg0, %c0_i32, %arg1 : i32, i32, i32
  }
  func.func @transform_2(%arg0: i32, %arg1: i32) -> (i32, i32, i32) {
    %c0_i32 = arith.constant 0 : i32
    %c0_i32_0 = arith.constant 0 : i32
    %c0_i32_1 = arith.constant 0 : i32
    return %arg0, %c0_i32, %c0_i32_0 : i32, i32, i32
  }
  func.func @transform_3(%arg0: i32, %arg1: i32) -> (i32, i32, i32) {
    %c0_i32 = arith.constant 0 : i32
    %c0_i32_0 = arith.constant 0 : i32
    %c0_i32_1 = arith.constant 0 : i32
    return %arg0, %c0_i32, %c0_i32_0 : i32, i32, i32
  }
  func.func @transform_4(%arg0: i32, %arg1: i32) -> (i32, i32, i32, i32) {
    %c0_i32 = arith.constant 0 : i32
    %c0_i32_0 = arith.constant 0 : i32
    %c0_i32_1 = arith.constant 0 : i32
    return %arg0, %arg1, %c0_i32, %c0_i32_0 : i32, i32, i32, i32
  }
}

</mosaic_0001>

<bundles_post_ra>
// kernel: pocoo_loss.2
= control target key start
LH: loop header
LB: loop body
LE: loop exit
PB: predicated region body
PF: predicated region fallthrough
CT: control target
= control target key end

     0   :  { %s1006_s11 = smov 0   ;;  %s1008_s12 = smov 0   ;;  %s1121_s0 = inlined_call_operand.vmem [shape: f32[2,8,4], index: 0, kind: input, shape index: {}]   ;;  %s1122_s1 = inlined_call_operand.vmem [shape: f32[2,8,4], index: 1, kind: input, shape index: {}]   ;;  %s1123_s2 = inlined_call_operand.<no memory space> [shape: f32[], index: 2, kind: input, shape index: {}]   ;;  %s1124_s3 = inlined_call_operand.vmem [shape: f32[2,8,4], index: 3, kind: input, shape index: {}]   ;;  %s1125_s4 = inlined_call_operand.vmem [shape: f32[2,4,16], index: 4, kind: input, shape index: {}]   ;;  %s1126_s5 = inlined_call_operand.<no memory space> [shape: f32[], index: 5, kind: input, shape index: {}]   ;;  %s1127_s6 = inlined_call_operand.vmem [shape: f32[2,4,16], index: 6, kind: input, shape index: {}]   ;;  %s1128_s7 = inlined_call_operand.<no memory space> [shape: f32[], index: 7, kind: input, shape index: {}]   ;;  %s1129_s8 = inlined_call_operand.vmem [shape: f32[2,1,1,1], index: 8, kind: output, shape index: {}]  }
   0x1   :  { %v13_v0 = vstv %s1128_s7  ;;  %v14_v1 = vstv %s1126_s5  ;;  %v1004_v2 = vstv %s1123_s2  ;;  %s1010_s13 = smov 0  }
   0x2 LB: > { %s34_s2 = sadd.s32 1, %s936_s12  ;;  %p852_p0 = scmp.ge.s32.totalorder %s940_s13, 1  ;;  %s940_s13 = sphi %s1010_s13, %s22_s13   ;;  %s936_s12 = sphi %s1008_s12, %s1131_s12   ;;  %s932_s11 = sphi %s1006_s11, %s1130_s11  }
   0x3   : > { %p36_p1 = scmp.ge.s32.totalorder %s34_s2, 2  ;;  %p274_p2 = scmp.lt.s32.totalorder %s940_s13, 3 }
   0x5   : > { %s1133_s2 = smov (%p36_p1, %s34_s2), 0  ;;  %p275_p3 = pnand %p852_p0, %p274_p2 }
   0x7   : > { %278 = sbr.rel (%p275_p3) target bundleno = 754 (0x2f2), region = 40 }
   0xe   : > { %p336_p4 = scmp.lt.s32.totalorder %s932_s11, 1  ;;  %v393_v3 = vlaneseq  ;;  %v942_v4 = vmov 1   ;;  %v943_v5 = vmov 0   ;;  %s944_s9 = smov 126   ;;  %v946_v19 = vmov 2  }
   0xf   : > { %904 = vset.pattern.permute.xlu0 %v942_v4  ;;  %903 = vset.pattern.permute.xlu1 %v943_v5  ;;  %s945_s16 = smov 127   ;;  %v947_v22 = vmov 0.0   ;;  %vm948_vm2 = vmmov 0   ;;  %vm447_vm6 = vcmask 1043456   ;;  %vm572_vm10 = vcmask 64512  }
  0x10   : > { %s1135_s11 = smov (!%p336_p4, %s932_s11), 1  ;;  %v1026_v6 = vshrl.u32 %v393_v3, 7  ;;  %v1028_v7 = vand.u32 127, %v393_v3  ;;  %866 = vmatprep.subr.mxu0 %v947_v22  ;;  %868 = vmatprep.mubr.msk.f32.mxu0 %vm948_vm2, %v947_v22  ;;  %vm724_vm2 = vcmask 0  }
  0x11   : > { %s855_s14 = sshll.u32 %s1135_s11, 3  ;;  %s1033_s15 = sshll.u32 %s1135_s11, 2 }
  0x12   : > { %vm396_vm0 = vcmp.lt.s32.totalorder %v1026_v6, 4  ;;  %s359_s18 = scalar_lea.vmem %s1121_s0, %s855_s14  ;;  %vm403_vm1 = vcmp.lt.s32.totalorder %v1028_v7, 16  ;;  %s342_s21 = scalar_lea.vmem %s1127_s6, %s1033_s15  ;;  %v486_v27 = vsub.s32 0, %v1026_v6  ;;  %v508_v30 = vsub.s32 1, %v1026_v6 }
  0x13   : > { %v469_v8 = vld [vmem:[%s359_s18] sm:$0xff]  ;;  %s353_s24 = scalar_lea.vmem %s1125_s4, %s1033_s15  ;;  %v538_v39 = vsub.s32 2, %v1026_v6  ;;  %v439_v60 = vadd.s32 8, %v1026_v6  ;;  %s369_s19 = scalar_lea.vmem %s1122_s1, %s1033_s15  ;;  %vm445_vm4 = vcmp.lt.s32.totalorder %v1028_v7, 8 }
  0x14   : > { %v388_v9 = vld [vmem:[%s342_s21] sm:$0xf]  ;;  %v477_v10 = vmul.f32 0.5, %v469_v8  ;;  %s376_s22 = scalar_lea.vmem %s1124_s3, %s1033_s15 }
  0x15   : > { %v397_v11 = vsel %vm396_vm0, %v388_v9, %v13_v0  ;;  %v412_v12 = vld [vmem:[%s353_s24] sm:$0xf]  ;;  %vm440_vm3 = vcmp.lt.s32.totalorder %v439_v60, 12  ;;  %s382_s24 = scalar_lea.vmem %s1129_s8, %s1135_s11 }
  0x16   : > { %v404_v13 = vsel %vm403_vm1, %v397_v11, %v13_v0  ;;  %v421_v14 = vsel %vm396_vm0, %v412_v12, %v14_v1  ;;  %479 = vrot.lane.b32.xlu0 %v477_v10, %s944_s9  ;;  %v436_v63 = vld [vmem:[%s369_s19] sm:$0xf] }
  0x17   : > { %406 = vst [vmem:[#allocation22] sm:$0xf] %v404_v13  ;;  %v428_v15 = vsel %vm403_vm1, %v421_v14, %v14_v1  ;;  %v450_v10 = vld [vmem:[%s376_s22] sm:$0xf] }
  0x18   : > { %430 = vst [vmem:[#allocation23] sm:$0xf] %v428_v15  ;;  %v455_v14 = vsel %vm396_vm0, %v450_v10, %v1004_v2 }
  0x1a   : > { %532 = vrot.lane.b32.xlu0 %v469_v8, %s945_s16 }
  0x1e   : > { %v467_v23 = vld [vmem:[#allocation22] sm:$0xf] }
  0x1f   : > { %v471_v24 = vmul.f32 0.5, %v467_v23  ;;  %v528_v32 = vrot.slane %v467_v23, 1 }
  0x21   : > { %v473_v25 = vrot.slane %v471_v24, 2  ;;  %v530_v40 = vmul.f32 %v528_v32, %v467_v23 }
  0x23   : > { %v475_v26 = vsub.f32 %v467_v23, %v473_v25  ;;  %v476_v29 = vadd.f32 %v473_v25, %v467_v23  ;;  %v539_v46 = vrot.slane %v530_v40, %v538_v39 }
  0x25   : > { %v497_v31 = vrot.slane %v475_v26, %v486_v27  ;;  %v487_v33 = vrot.slane %v476_v29, %v486_v27  ;;  %v509_v35 = vrot.slane %v476_v29, %v508_v30  ;;  %v518_v37 = vrot.slane %v475_v26, %v508_v30  ;;  %v468_v29 = vld [vmem:[#allocation23] sm:$0xf] }
  0x26   : > { %v675_v30 = vsub.f32 1.0, %v468_v29 }
  0x88   : > { %v480_v16 = vpop.permute.xlu0 %479 }
  0x89   : > { %v483_v17 = vadd.f32 %v480_v16, %v469_v8  ;;  %v482_v18 = vsub.f32 %v469_v8, %v480_v16 }
  0x8b   : > { %511 = vperm.xlu0 %904, %v483_v17   ;;  %490 = vperm.xlu1 %903, %v483_v17   ;;  %v460_v17 = vsel %vm445_vm4, %v455_v14, %v1004_v2 }
  0x8c   : > { %v533_v20 = vpop.permute.xlu0 %532 }
  0x8d   : > { %v535_v21 = vmul.f32 %v533_v20, %v469_v8 }
  0x8f   : > { %500 = vperm.xlu1 %903, %v482_v18   ;;  %907 = vset.pattern.permute.xlu0 %v946_v19 }
  0x93   : > { %905 = vset.pattern.permute.xlu1 %v942_v4  ;;  %v441_v4 = vsel %vm440_vm3, %v436_v63, %v1004_v2 }
  0x94   : > { %520 = vperm.xlu1 %905, %v482_v18   ;;  %v446_v9 = vsel %vm445_vm4, %v441_v4, %v1004_v2 }
  0x95   : > { %v448_v12 = vsel %vm447_vm6, %v446_v9, %v1004_v2 }
  0x96   : > { %v449_v15 = vrot.slane %v448_v12, 4 }
  0x98   : > { %906 = vset.pattern.permute.xlu1 %v946_v19  ;;  %v463_v19 = vmax.f32 %v460_v17, %v449_v15 }
  0x99   : > { %542 = vperm.xlu1 %906, %v535_v21   ;;  %v949_v21 = vmov 1.0  }
 0x10a   : > { %v491_v28 = vpop.permute.xlu1 %490  ;;  %v512_v38 = vpop.permute.xlu0 %511 }
 0x10b   : > { %v493_v41 = vmin.f32 %v487_v33, %v491_v28  ;;  %v514_v43 = vmin.f32 %v509_v35, %v512_v38 }
 0x10e   : > { %v501_v34 = vpop.permute.xlu1 %500 }
 0x10f   : > { %v503_v36 = vmax.f32 %v497_v31, %v501_v34 }
 0x111   : > { %v504_v44 = vsub.f32 %v493_v41, %v503_v36 }
 0x113   : > { %v521_v42 = vpop.permute.xlu1 %520  ;;  %v505_v48 = vmax.f32 %v504_v44, 0.0 }
 0x114   : > { %v523_v45 = vmax.f32 %v518_v37, %v521_v42 }
 0x116   : > { %v524_v47 = vsub.f32 %v514_v43, %v523_v45  ;;  %v686_v43 = vmul.f32 %v468_v29, %v468_v29 }
 0x118   : > { %v525_v49 = vmax.f32 %v524_v47, 0.0  ;;  %v543_v50 = vpop.permute.xlu1 %542 }
 0x119   : > { %v545_v51 = vadd.f32 %v543_v50, %v539_v46 }
 0x11a   : > { %v526_v52 = vmul.f32 %v525_v49, %v505_v48 }
 0x11c   : > { %v546_v53 = vsub.f32 %v545_v51, %v526_v52 }
 0x11e   : > { %v547_v54 = vadd.f32 1e-06, %v546_v53 }
 0x120   : > { %908 = vrcp.f32 %v547_v54 }
 0x12a   : > { %v909_v55 = vpop.eup %908 }
 0x12b   : > { %v549_v56 = vmul.f32 %v909_v55, %v526_v52 }
 0x12d   : > { %v550_v57 = vrot.slane %v549_v56, 4 }
 0x12f   : > { %v551_v58 = vmax.f32 %v549_v56, %v550_v57 }
 0x131   : > { %v552_v59 = vrot.slane %v551_v58, 2 }
 0x133   : > { %v553_v61 = vmax.f32 %v551_v58, %v552_v59 }
 0x135   : > { %v554_v62 = vrot.slane %v553_v61, 1 }
 0x137   : > { %v555_v3 = vmax.f32 %v553_v61, %v554_v62 }
 0x139   : > { %vm558_vm5 = vcmp.ge.f32.partialorder %v549_v56, %v555_v3  ;;  %vm666_vm14 = vcmp.gt.f32.partialorder %v555_v3, 0.5 }
 0x13a   : > { %v559_v5 = vsel %vm558_vm5, %v1026_v6, 8  ;;  %v861_v38 = vsel %vm666_vm14, 1.0, %v947_v22 }
 0x13b   : > { %v560_v8 = vrot.slane %v559_v5, 4  ;;  %v669_v42 = vsub.f32 1.0, %v861_v38 }
 0x13d   : > { %vm561_vm7 = vcmp.lt.s32.totalorder %v559_v5, %v560_v8  ;;  %v687_v50 = vmul.f32 %v686_v43, %v669_v42 }
 0x13e   : > { %v562_v11 = vsel %vm561_vm7, %v559_v5, %v560_v8 }
 0x13f   : > { %v563_v13 = vrot.slane %v562_v11, 2  ;;  %v689_v55 = vrot.slane %v687_v50, 4 }
 0x141   : > { %vm564_vm8 = vcmp.lt.s32.totalorder %v562_v11, %v563_v13 }
 0x142   : > { %v565_v16 = vsel %vm564_vm8, %v562_v11, %v563_v13 }
 0x143   : > { %v566_v18 = vrot.slane %v565_v16, 1 }
 0x145   : > { %vm567_vm9 = vcmp.lt.s32.totalorder %v565_v16, %v566_v18 }
 0x146   : > { %v568_v20 = vsel %vm567_vm9, %v565_v16, %v566_v18 }
 0x147   : > { %vm569_vm11 = vcmp.eq.s32.totalorder %v1026_v6, %v568_v20 }
 0x148   : > { %867 = vmatpush3.msk.msra.mxu0 %vm569_vm11, %v949_v21 }
 0x149   : > { %869 = vmatmul.mubr.msk.f32.vlgmr.msra.gmra.mrb[0].mxu0 %vm572_vm10, %v463_v19 }
 0x21c   : > { %v642_v23 = vpop.f32.mrb[0].mxu0 }
 0x21d   : > { %v646_v24 = vmul.f32 0.015625, %v642_v23  ;;  %v870_v25 = vpop.f32.mrb[1].mxu0  ;;  %v684_v22 = vsub.f32 1.0, %v642_v23 }
 0x21f   : > { %v648_v26 = vrot.slane %v646_v24, 1 }
 0x221   : > { %v650_v27 = vmul.f32 %v648_v26, %v646_v24 }
 0x223   : > { %910 = vrsqrt.f32 %v650_v27  ;;  %vm653_vm12 = vcmp.eq.f32.partialorder %v650_v27, inf  ;;  %v656_v32 = vand.u32 2147483648, %v650_v27  ;;  %vm655_vm13 = vcmp.eq.f32.partialorder %v650_v27, 0.0 }
 0x224   : > { %912 = vlog2.f32 %v675_v30 }
 0x225   : > { %914 = vlog2.f32 %v468_v29 }
 0x22d   : > { %v911_v28 = vpop.eup %910 }
 0x22e   : > { %v652_v31 = vmul.f32 %v911_v28, %v650_v27  ;;  %v913_v36 = vpop.eup %912 }
 0x22f   : > { %v915_v37 = vpop.eup %914  ;;  %v677_v47 = vmul.f32 0.6931472, %v913_v36 }
 0x230   : > { %v654_v33 = vsel %vm653_vm12, %v650_v27, %v652_v31  ;;  %v673_v46 = vmul.f32 0.6931472, %v915_v37 }
 0x231   : > { %v657_v34 = vsel %vm655_vm13, %v656_v32, %v654_v33  ;;  %v678_v53 = vmax.f32 %v677_v47, -100.0 }
 0x232   : > { %v658_v35 = vsub.f32 1.0, %v657_v34  ;;  %v674_v52 = vmax.f32 %v673_v46, -100.0 }
 0x233   : > { %v697_v59 = vrot.slane %v678_v53, 4 }
 0x234   : > { %916 = vrsqrt.f32 %v658_v35  ;;  %vm661_vm15 = vcmp.eq.f32.partialorder %v658_v35, inf  ;;  %v664_v44 = vand.u32 2147483648, %v658_v35  ;;  %vm663_vm0 = vcmp.eq.f32.partialorder %v658_v35, 0.0 }
 0x235   : > { %v693_v58 = vrot.slane %v674_v52, 4 }
 0x23e   : > { %v917_v40 = vpop.eup %916 }
 0x23f   : > { %v660_v41 = vmul.f32 %v917_v40, %v658_v35 }
 0x241   : > { %v662_v45 = vsel %vm661_vm15, %v658_v35, %v660_v41 }
 0x242   : > { %v665_v48 = vsel %vm663_vm0, %v664_v44, %v662_v45 }
 0x243   : > { %v670_v49 = vadd.f32 1.0, %v665_v48 }
 0x245   : > { %v671_v51 = vmul.f32 %v861_v38, %v670_v49 }
 0x247   : > { %v682_v54 = vrot.slane %v671_v51, %v538_v39 }
 0x249   : > { %v683_v56 = vmul.f32 %v682_v54, %v642_v23  ;;  %v685_v57 = vmul.f32 %v684_v22, %v682_v54 }
 0x24b   : > { %v691_v60 = vadd.f32 %v689_v55, %v685_v57  ;;  %v695_v61 = vmul.f32 %v693_v58, %v683_v56 }
 0x24d   : > { %v699_v62 = vmul.f32 %v697_v59, %v691_v60 }
 0x24f   : > { %v700_v63 = vadd.f32 %v699_v62, %v695_v61 }
 0x251   : > { %v701_v3 = vsub.f32 0.0, %v700_v63 }
 0x253   : > { %v710_v4 = vsel %vm403_vm1, %v701_v3, 0.0 }
 0x254   : > { %v712_v5 = vrot.slane %v710_v4, 4 }
 0x256   : > { %v715_v8 = vsel %vm447_vm6, %v712_v5, 0.0 }
 0x257   : > { %v716_v6 = vrot.slane %v715_v8, 4 }
 0x259   : > { %v717_v39 = vadd.f32 %v716_v6, %v715_v8 }
 0x25b   : > { %v718_v9 = vrot.slane %v717_v39, 2 }
 0x25d   : > { %v719_v10 = vadd.f32 %v718_v9, %v717_v39 }
 0x25f   : > { %v720_v11 = vrot.slane %v719_v10, 1 }
 0x261   : > { %v721_v12 = vadd.f32 %v720_v11, %v719_v10 }
 0x263   : > { %722 = vadd.xlane.f32.xlu0 %v721_v12 }
 0x2f0   : > { %v723_v13 = vpop.xlane.xlu0 %722 }
 0x2f1   : > { %725 = vst.msk [vmem:[%s382_s24] sm:$0x1] %vm724_vm2, %v723_v13 }
 0x2f2 PF: > { %s22_s13 = sadd.s32 1, %s940_s13   ;;  %s1130_s11 = smov %s936_s12 }
 0x2f3   : > { %p19_p5 = scmp.ge.s32.totalorder %s22_s13, 4   ;;  %s1131_s12 = smov %s1133_s2 }
 0x2f5   :  { %21 = sbr.rel (!%p19_p5) target bundleno = 2 (0x2), region = 82 }

</bundles_post_ra>
